<compile_context>
chip_gen: v7x
topology: tpu7x:2x2x1
jax: 0.10.0
libtpu: 0.0.40
codegen_flags: <defaults>
</compile_context>

<pallas_src>
import functools

import jax
import jax.numpy as jnp
from jax.experimental import pallas as pl
from jax.experimental.pallas import tpu as pltpu


def _round_up(x: int, m: int) -> int:
    return -(-x // m) * m


def _tv_kernel(x_ref, h_ref, w_ref, acc_h, acc_w, *, W: int):
    """One reduction step over a (TBC, H*W) block of flattened image planes.

    Grid = (n_cores, n_steps):
      axis 0 ("parallel")  : independent partial reductions (megacore split)
      axis 1 ("arbitrary") : sequential reduction over blocks of B*C planes

    x_ref        : (TBC, H*W) input block (original dtype, upcast here)
    h_ref, w_ref : (1, 1, 1) per-core partial sums (written on last step only)
    acc_h, acc_w : resident f32 VMEM accumulators (elementwise += every step)
    """
    step = pl.program_id(1)

    @pl.when(step == 0)
    def _init():
        acc_h[...] = jnp.zeros_like(acc_h)
        acc_w[...] = jnp.zeros_like(acc_w)

    x = x_ref[...].astype(jnp.float32)            # (TBC, H*W)

    # Vertical neighbours: flat offset W. Every position p < (H-1)*W is a
    # valid (row h, row h+1) pair, so no mask is needed.
    dh = x[:, W:] - x[:, :-W]                     # (TBC, H*W - W)
    acc_h[...] += dh * dh

    # Horizontal neighbours: flat offset 1. Positions with p % W == W-1 pair
    # the last column with the next row's first column -> mask them out.
    dw = x[:, 1:] - x[:, :-1]                     # (TBC, H*W - 1)
    pos = jax.lax.broadcasted_iota(jnp.int32, dw.shape, 1)
    dw = jnp.where((pos % W) == (W - 1), 0.0, dw)
    acc_w[...] += dw * dw

    # Deferred scalar reduction: only on the last step of this core's slice.
    @pl.when(step == pl.num_programs(1) - 1)
    def _finalize():
        h_ref[...] = jnp.broadcast_to(jnp.sum(acc_h[...]), h_ref.shape)
        w_ref[...] = jnp.broadcast_to(jnp.sum(acc_w[...]), w_ref.shape)


def tv_loss(x, tv_loss_weight: float = 1.0, *, target_block_elems: int = 256 * 1024):
    """TV loss matching PyTorch TVLoss.forward. x: (B, C, H, W). Returns f32 scalar."""
    B, C, H, W = x.shape
    BC, HW = B * C, H * W

    # Lane-dense layout: one flattened plane per row.
    x_flat = x.reshape(BC, HW)

    # --- block choice: ~1 MiB of f32 per block, TBC a multiple of 8 ----------
    # TODO(synk): add H-tiling for very large planes (8 * H * W * 4 bytes
    # exceeding the VMEM budget); current design loads whole flattened planes.
    tbc = max(8, (target_block_elems // max(HW, 1)) // 8 * 8)
    tbc = min(tbc, _round_up(BC, 8))

    n_tiles = -(-BC // tbc)
    n_cores = 2 if n_tiles >= 2 else 1            # v7x megacore split
    n_steps = -(-n_tiles // n_cores)
    bc_pad = n_cores * n_steps * tbc
    if bc_pad != BC:                              # zero rows contribute nothing
        x_flat = jnp.pad(x_flat, ((0, bc_pad - BC), (0, 0)))

    h_part, w_part = pl.pallas_call(
        functools.partial(_tv_kernel, W=W),
        out_shape=(
            jax.ShapeDtypeStruct((n_cores, 1, 1), jnp.float32),
            jax.ShapeDtypeStruct((n_cores, 1, 1), jnp.float32),
        ),
        grid_spec=pltpu.PrefetchScalarGridSpec(
            num_scalar_prefetch=0,
            grid=(n_cores, n_steps),
            in_specs=[
                pl.BlockSpec((tbc, HW), lambda p, i: (p * n_steps + i, 0)),
            ],
            out_specs=(
                pl.BlockSpec((1, 1, 1), lambda p, i: (p, 0, 0)),
                pl.BlockSpec((1, 1, 1), lambda p, i: (p, 0, 0)),
            ),
            scratch_shapes=[
                pltpu.VMEM((tbc, HW - W), jnp.float32),
                pltpu.VMEM((tbc, HW - 1), jnp.float32),
            ],
        ),
        compiler_params=pltpu.CompilerParams(
            dimension_semantics=("parallel", "arbitrary"),
            vmem_limit_bytes=48 * 1024 * 1024,
        ),
    )(x_flat)

    h_tv = jnp.sum(h_part)
    w_tv = jnp.sum(w_part)
    count_h = C * (H - 1) * W          # numel of x[:, :, 1:, :] per batch item
    count_w = C * H * (W - 1)          # numel of x[:, :, :, 1:] per batch item
    return (tv_loss_weight * 2.0 * (h_tv / count_h + w_tv / count_w) / B).astype(
        jnp.float32
    )


def tv_loss_ref(x, tv_loss_weight: float = 1.0):
    """Pure-JAX reference mirroring the PyTorch module."""
    B, C, H, W = x.shape
    count_h = C * (H - 1) * W
    count_w = C * H * (W - 1)
    xf = x.astype(jnp.float32)
    h_tv = jnp.sum((xf[:, :, 1:, :] - xf[:, :, :-1, :]) ** 2)
    w_tv = jnp.sum((xf[:, :, :, 1:] - xf[:, :, :, :-1]) ** 2)
    return tv_loss_weight * 2.0 * (h_tv / count_h + w_tv / count_w) / B


if __name__ == "__main__":
    key = jax.random.PRNGKey(0)
    B, C, H, W = 2, 4, 16, 16
    x = jax.random.normal(key, (B, C, H, W), dtype=jnp.float32)

    out = jax.block_until_ready(tv_loss(x, tv_loss_weight=1.0))
    ref = jax.block_until_ready(tv_loss_ref(x, 1.0))
    assert jnp.allclose(out, ref, rtol=1e-5, atol=1e-5), (out, ref)

    # Second config: exercises BC zero-padding, the 2-way parallel split and
    # the multi-step resident-accumulator path (tiny blocks forced on purpose).
    x2 = jax.random.normal(jax.random.PRNGKey(0), (2, 15, 16, 16), dtype=jnp.float32)
    out2 = jax.block_until_ready(tv_loss(x2, 0.5, target_block_elems=2048))
    ref2 = jax.block_until_ready(tv_loss_ref(x2, 0.5))
    assert jnp.allclose(out2, ref2, rtol=1e-5, atol=1e-5), (out2, ref2)

    print("KERNEL_OK")
</pallas_src>

<mosaic_0001>
module attributes {stable_mosaic.version = 11 : i64} {
  func.func @_tv_kernel(%arg0: i32, %arg1: i32, %arg2: memref<8x256xf32, #tpu.memory_space<vmem>>, %arg3: memref<1x1x1xf32, #tpu.memory_space<vmem>>, %arg4: memref<1x1x1xf32, #tpu.memory_space<vmem>>, %arg5: memref<8x240xf32, #tpu.memory_space<vmem>>, %arg6: memref<8x255xf32, #tpu.memory_space<vmem>>) attributes {dimension_semantics = [#tpu.dimension_semantics<parallel>, #tpu.dimension_semantics<arbitrary>], iteration_bounds = array<i64: 1, 1>, scalar_prefetch = 0 : i64, scratch_operands = 2 : i64, tpu.core_type = #tpu.core_type<tc>, window_params = [{transform_indices = @transform_0, window_bounds = array<i64: 8, 256>}, {transform_indices = @transform_1, window_bounds = array<i64: 1, 1, 1>}, {transform_indices = @transform_2, window_bounds = array<i64: 1, 1, 1>}]} {
    %c0_i32 = arith.constant 0 : i32
    %0 = arith.cmpi eq, %arg1, %c0_i32 : i32
    %1 = arith.extui %0 : i1 to i32
    %c0_i32_0 = arith.constant 0 : i32
    %2 = arith.cmpi ne, %1, %c0_i32_0 : i32
    scf.if %2 {
      %cst_16 = arith.constant 0.000000e+00 : f32
      %42 = vector.broadcast %cst_16 : f32 to vector<8x240xf32>
      %c0_17 = arith.constant 0 : index
      %c0_18 = arith.constant 0 : index
      %43 = vector.load %arg5[%c0_17, %c0_18] : memref<8x240xf32, #tpu.memory_space<vmem>>, vector<8x240xf32>
      tpu.vector_store %arg5[%c0_17, %c0_18], %42 {strides = array<i32>} : memref<8x240xf32, #tpu.memory_space<vmem>>, vector<8x240xf32>,
      %cst_19 = arith.constant 0.000000e+00 : f32
      %44 = vector.broadcast %cst_19 : f32 to vector<8x255xf32>
      %c0_20 = arith.constant 0 : index
      %c0_21 = arith.constant 0 : index
      %45 = vector.load %arg6[%c0_20, %c0_21] : memref<8x255xf32, #tpu.memory_space<vmem>>, vector<8x255xf32>
      tpu.vector_store %arg6[%c0_20, %c0_21], %44 {strides = array<i32>} : memref<8x255xf32, #tpu.memory_space<vmem>>, vector<8x255xf32>,
    } else {
    }
    %c0 = arith.constant 0 : index
    %c0_1 = arith.constant 0 : index
    %3 = vector.load %arg2[%c0, %c0_1] : memref<8x256xf32, #tpu.memory_space<vmem>>, vector<8x256xf32>
    %4 = vector.extract_strided_slice %3 {offsets = [0, 16], sizes = [8, 240], strides = [1, 1]} : vector<8x256xf32> to vector<8x240xf32>
    %5 = vector.extract_strided_slice %3 {offsets = [0, 0], sizes = [8, 240], strides = [1, 1]} : vector<8x256xf32> to vector<8x240xf32>
    %6 = arith.subf %4, %5 : vector<8x240xf32>
    %c0_2 = arith.constant 0 : index
    %c0_3 = arith.constant 0 : index
    %7 = vector.load %arg5[%c0_2, %c0_3] : memref<8x240xf32, #tpu.memory_space<vmem>>, vector<8x240xf32>
    %8 = arith.mulf %6, %6 : vector<8x240xf32>
    %9 = arith.addf %7, %8 : vector<8x240xf32>
    %c0_4 = arith.constant 0 : index
    %c0_5 = arith.constant 0 : index
    %10 = vector.load %arg5[%c0_4, %c0_5] : memref<8x240xf32, #tpu.memory_space<vmem>>, vector<8x240xf32>
    tpu.vector_store %arg5[%c0_4, %c0_5], %9 {strides = array<i32>} : memref<8x240xf32, #tpu.memory_space<vmem>>, vector<8x240xf32>,
    %11 = vector.extract_strided_slice %3 {offsets = [0, 1], sizes = [8, 255], strides = [1, 1]} : vector<8x256xf32> to vector<8x255xf32>
    %12 = vector.extract_strided_slice %3 {offsets = [0, 0], sizes = [8, 255], strides = [1, 1]} : vector<8x256xf32> to vector<8x255xf32>
    %13 = arith.subf %11, %12 : vector<8x255xf32>
    %14 = tpu.iota {dimensions = array<i32: 1>} : vector<8x255xi32>
    %c16_i32 = arith.constant 16 : i32
    %c0_i32_6 = arith.constant 0 : i32
    %15 = arith.cmpi eq, %c16_i32, %c0_i32_6 : i32
    %c1_i32 = arith.constant 1 : i32
    %16 = arith.select %15, %c1_i32, %c16_i32 : i32
    %17 = vector.broadcast %16 : i32 to vector<8x255xi32>
    %18 = arith.remsi %14, %17 : vector<8x255xi32>
    %c0_i32_7 = arith.constant 0 : i32
    %19 = vector.broadcast %c0_i32_7 : i32 to vector<8x255xi32>
    %20 = arith.cmpi ne, %18, %19 : vector<8x255xi32>
    %c0_i32_8 = arith.constant 0 : i32
    %21 = vector.broadcast %c0_i32_8 : i32 to vector<8x255xi32>
    %22 = arith.cmpi slt, %18, %21 : vector<8x255xi32>
    %c0_i32_9 = arith.constant 0 : i32
    %23 = arith.cmpi slt, %16, %c0_i32_9 : i32
    %24 = vector.broadcast %23 : i1 to vector<8x255xi1>
    %25 = vector.broadcast %24 : vector<8x255xi1> to vector<8x255xi1>
    %26 = arith.xori %22, %25 : vector<8x255xi1>
    %27 = arith.andi %26, %20 : vector<8x255xi1>
    %28 = vector.broadcast %16 : i32 to vector<8x255xi32>
    %29 = arith.addi %18, %28 : vector<8x255xi32>
    %30 = arith.select %27, %29, %18 : vector<8x255xi1>, vector<8x255xi32>
    %c15_i32 = arith.constant 15 : i32
    %31 = vector.broadcast %c15_i32 : i32 to vector<8x255xi32>
    %32 = arith.cmpi eq, %30, %31 : vector<8x255xi32>
    %cst = arith.constant 0.000000e+00 : f32
    %33 = vector.broadcast %cst : f32 to vector<8x255xf32>
    %34 = arith.select %32, %33, %13 : vector<8x255xi1>, vector<8x255xf32>
    %c0_10 = arith.constant 0 : index
    %c0_11 = arith.constant 0 : index
    %35 = vector.load %arg6[%c0_10, %c0_11] : memref<8x255xf32, #tpu.memory_space<vmem>>, vector<8x255xf32>
    %36 = arith.mulf %34, %34 : vector<8x255xf32>
    %37 = arith.addf %35, %36 : vector<8x255xf32>
    %c0_12 = arith.constant 0 : index
    %c0_13 = arith.constant 0 : index
    %38 = vector.load %arg6[%c0_12, %c0_13] : memref<8x255xf32, #tpu.memory_space<vmem>>, vector<8x255xf32>
    tpu.vector_store %arg6[%c0_12, %c0_13], %37 {strides = array<i32>} : memref<8x255xf32, #tpu.memory_space<vmem>>, vector<8x255xf32>,
    %c0_i32_14 = arith.constant 0 : i32
    %39 = arith.cmpi eq, %arg1, %c0_i32_14 : i32
    %40 = arith.extui %39 : i1 to i32
    %c0_i32_15 = arith.constant 0 : i32
    %41 = arith.cmpi ne, %40, %c0_i32_15 : i32
    scf.if %41 {
      %c0_16 = arith.constant 0 : index
      %c0_17 = arith.constant 0 : index
      %42 = vector.load %arg5[%c0_16, %c0_17] : memref<8x240xf32, #tpu.memory_space<vmem>>, vector<8x240xf32>
      %43 = vector.shape_cast %42 : vector<8x240xf32> to vector<1x8x240xf32>
      %cst_18 = arith.constant dense<0.000000e+00> : vector<1xf32>
      %44 = vector.multi_reduction <add>, %43, %cst_18 [1, 2] : vector<1x8x240xf32> to vector<1xf32>
      %45 = vector.shape_cast %44 : vector<1xf32> to vector<1x1x1xf32>
      %46 = vector.extract %45[0, 0, 0] : f32 from vector<1x1x1xf32>
      %47 = vector.broadcast %46 : f32 to vector<1x1x1xf32>
      %c0_19 = arith.constant 0 : index
      %c0_20 = arith.constant 0 : index
      %c0_21 = arith.constant 0 : index
      %48 = vector.load %arg3[%c0_19, %c0_20, %c0_21] : memref<1x1x1xf32, #tpu.memory_space<vmem>>, vector<1x1x1xf32>
      tpu.vector_store %arg3[%c0_19, %c0_20, %c0_21], %47 {strides = array<i32>} : memref<1x1x1xf32, #tpu.memory_space<vmem>>, vector<1x1x1xf32>,
      %c0_22 = arith.constant 0 : index
      %c0_23 = arith.constant 0 : index
      %49 = vector.load %arg6[%c0_22, %c0_23] : memref<8x255xf32, #tpu.memory_space<vmem>>, vector<8x255xf32>
      %50 = vector.shape_cast %49 : vector<8x255xf32> to vector<1x8x255xf32>
      %cst_24 = arith.constant dense<0.000000e+00> : vector<1xf32>
      %51 = vector.multi_reduction <add>, %50, %cst_24 [1, 2] : vector<1x8x255xf32> to vector<1xf32>
      %52 = vector.shape_cast %51 : vector<1xf32> to vector<1x1x1xf32>
      %53 = vector.extract %52[0, 0, 0] : f32 from vector<1x1x1xf32>
      %54 = vector.broadcast %53 : f32 to vector<1x1x1xf32>
      %c0_25 = arith.constant 0 : index
      %c0_26 = arith.constant 0 : index
      %c0_27 = arith.constant 0 : index
      %55 = vector.load %arg4[%c0_25, %c0_26, %c0_27] : memref<1x1x1xf32, #tpu.memory_space<vmem>>, vector<1x1x1xf32>
      tpu.vector_store %arg4[%c0_25, %c0_26, %c0_27], %54 {strides = array<i32>} : memref<1x1x1xf32, #tpu.memory_space<vmem>>, vector<1x1x1xf32>,
    } else {
    }
    return
  }
  func.func @transform_0(%arg0: i32, %arg1: i32) -> (i32, i32) {
    %c1_i32 = arith.constant 1 : i32
    %0 = arith.muli %arg0, %c1_i32 : i32
    %1 = arith.addi %0, %arg1 : i32
    %c0_i32 = arith.constant 0 : i32
    %c0_i32_0 = arith.constant 0 : i32
    return %1, %c0_i32 : i32, i32
  }
  func.func @transform_1(%arg0: i32, %arg1: i32) -> (i32, i32, i32) {
    %c0_i32 = arith.constant 0 : i32
    %c0_i32_0 = arith.constant 0 : i32
    %c0_i32_1 = arith.constant 0 : i32
    return %arg0, %c0_i32, %c0_i32_0 : i32, i32, i32
  }
  func.func @transform_2(%arg0: i32, %arg1: i32) -> (i32, i32, i32) {
    %c0_i32 = arith.constant 0 : i32
    %c0_i32_0 = arith.constant 0 : i32
    %c0_i32_1 = arith.constant 0 : i32
    return %arg0, %c0_i32, %c0_i32_0 : i32, i32, i32
  }
}

</mosaic_0001>

<bundles_post_ra>
// kernel: tpu_custom_call.1
= control target key start
LH: loop header
LB: loop body
LE: loop exit
PB: predicated region body
PF: predicated region fallthrough
CT: control target
= control target key end

     0   :  { %8 = vsyncpa [#allocation5], 0  ;;  %s354_s0 = inlined_call_operand.hbm [shape: f32[8,256], index: 0, kind: input, shape index: {}]   ;;  %s355_s1 = inlined_call_operand.hbm [shape: f32[1,1,1], index: 1, kind: output, shape index: {0}]   ;;  %s356_s2 = inlined_call_operand.hbm [shape: f32[1,1,1], index: 2, kind: output, shape index: {1}]  }
   0x1   :  { %9 = vsyncpa [#allocation6], 0 }
   0x2   :  { %10 = vsyncpa [#allocation9], 0  ;;  %s277_s9 = smov [#allocation4]   ;;  %s205_s13 = scalar_lea.hbm %s354_s0, 256 }
   0x3   :  { %s21_s10 = sshll.u32 %s277_s9, 4  ;;  %p206_p0 = scmp.ne.s32.totalorder %s354_s0, %s205_s13  ;;  %s22_s10 = int_to_ptr.vmem [resolvable:$true] %s21_s10 }
   0x4   :  { %p209_p1 = scmp.lt.u32.totalorder %s205_s13, %s354_s0 }
   0x6   :  { %p211_p2 = pnand %p209_p1, %p206_p0 }
   0x8   :  { %214 = shalt.err (!%p211_p2)
}
   0x9   :  { %s215_s18 = scalar_lea.vmem %s22_s10, 256  ;;  %p220_p4 = scmp.lt.s32.totalorder %s22_s10, %s22_s10 }
   0xa   :  { %p216_p3 = scmp.ne.s32.totalorder %s22_s10, %s215_s18  ;;  %p221_p5 = scmp.lt.s32.totalorder %s215_s18, %s215_s18 }
   0xc   :  { %p222_p6 = por %p221_p5, %p220_p4 }
   0xe   :  { %p223_p7 = pnand %p222_p6, %p216_p3 }
  0x10   :  { %226 = shalt.err (!%p223_p7)
}
  0x11   :  { %24 = dma.hbm_to_vmem [thread:$0]  %s354_s0, 256, %s22_s10, [#allocation5]  }
  0x12   :  { %271 = dma.done.wait [#allocation5], 256  }
  0x13   :  { %272 = vsyncadd [#allocation5], 4294967040  ;;  %v39_v0 = vld [vmem:[#allocation4] sm:$0xff]  ;;  %s278_s21 = smov 16   ;;  %s279_s22 = smov 1   ;;  %v40_v1 = vld [vmem:[#allocation4 + $0x8] sm:$0xff]  ;;  %v81_v15 = vlaneseq }
  0x14   :  { %43 = vrot.lane.b32.xlu1 %v39_v0, %s278_s21  ;;  %71 = vrot.lane.b32.xlu0 %v39_v0, %s279_s22  ;;  %vm37_vm0 = vcmask 1039360   ;;  %v280_v2 = vmov 0.0   ;;  %vm34_vm1 = vcmask 916480   ;;  %vm47_vm2 = vcmask 130048   ;;  %s281_s0 = smov 127   ;;  %s282_s23 = smov 112  }
  0x15   :  { %38 = vst.msk [vmem:[#allocation3 + $0x8] sm:$0xff] %vm37_vm0, %v280_v2  ;;  %vm75_vm3 = vcmask 7168   ;;  %v82_v16 = vand.u32 127, %v81_v15  ;;  %s283_s24 = smov [#allocation7]   ;;  %s284_s26 = smov [#allocation8]   ;;  %vm147_vm6 = vcmask 0  }
  0x16   :  { %35 = vst.msk [vmem:[#allocation2 + $0x8] sm:$0xff] %vm34_vm1, %v280_v2  ;;  %s170_s25 = sshll.u32 %s283_s24, 4  ;;  %s180_s27 = sshll.u32 %s284_s26, 4  ;;  %s171_s25 = int_to_ptr.vmem [resolvable:$true] %s170_s25  ;;  %s320_s27 = int_to_ptr.vmem [resolvable:$true] %s180_s27 }
  0x17   :  { %v83_v17 = vadd.s32 128, %v82_v16  ;;  %v88_v19 = vand.u32 15, %v82_v16  ;;  %s227_s30 = scalar_lea.vmem %s171_s25, 16  ;;  %s231_s3 = scalar_lea.vmem %s171_s25, 32 }
  0x18   :  { %45 = vrot.lane.b32.xlu1 %v40_v1, %s278_s21  ;;  %73 = vrot.lane.b32.xlu0 %v40_v1, %s279_s22  ;;  %p228_p8 = scmp.ne.s32.totalorder %s171_s25, %s227_s30  ;;  %p232_p9 = scmp.lt.s32.totalorder %s171_s25, %s171_s25 }
  0x19   :  { %v95_v18 = vand.u32 15, %v83_v17  ;;  %vm108_vm5 = vcmp.eq.s32.totalorder %v88_v19, 15  ;;  %p233_p10 = scmp.lt.s32.totalorder %s231_s3, %s227_s30 }
  0x1b   :  { %vm109_vm4 = vcmp.eq.s32.totalorder %v95_v18, 15  ;;  %p234_p11 = por %p233_p10, %p232_p9 }
  0x1c   :  { %v123_v24 = vld [vmem:[#allocation3 + $0x8] sm:$0xff] }
  0x1d   :  { %v54_v27 = vld [vmem:[#allocation2 + $0x8] sm:$0xff]  ;;  %p235_p12 = pnand %p234_p11, %p228_p8 }
  0x86   :  { %v44_v3 = vpop.permute.xlu1 %43  ;;  %v72_v4 = vpop.permute.xlu0 %71 }
  0x87   :  { %v51_v5 = vsub.f32 %v39_v0, %v44_v3  ;;  %v79_v6 = vsub.f32 %v39_v0, %v72_v4 }
  0x89   :  { %v55_v7 = vmul.f32 %v51_v5, %v51_v5  ;;  %112 = vrot.lane.b32.xlu0 %v79_v6, %s281_s0 }
  0x8a   :  { %v46_v8 = vpop.permute.xlu1 %45  ;;  %v74_v9 = vpop.permute.xlu0 %73 }
  0x8b   :  { %v48_v10 = vsel %vm47_vm2, %v44_v3, %v46_v8  ;;  %v76_v11 = vsel %vm75_vm3, %v72_v4, %v74_v9 }
  0x8c   :  { %v52_v12 = vsub.f32 %v40_v1, %v48_v10  ;;  %v80_v13 = vsub.f32 %v40_v1, %v76_v11 }
  0x8d   :  { %59 = vrot.lane.b32.xlu0 %v55_v7, %s282_s23 }
  0x8e   :  { %114 = vrot.lane.b32.xlu1 %v80_v13, %s281_s0  ;;  %v56_v14 = vmul.f32 %v52_v12, %v52_v12 }
  0x92   :  { %61 = vrot.lane.b32.xlu1 %v56_v14, %s282_s23 }
  0xfb   :  { %v113_v20 = vpop.permute.xlu0 %112 }
  0xff   :  { %v60_v29 = vpop.permute.xlu0 %59 }
 0x100   :  { %v115_v21 = vpop.permute.xlu1 %114 }
 0x101   :  { %v117_v22 = vsel %vm37_vm0, %v113_v20, %v115_v21  ;;  %v121_v23 = vsel %vm109_vm4, 0.0, %v115_v21 }
 0x102   :  { %v120_v25 = vsel %vm108_vm5, 0.0, %v117_v22  ;;  %v125_v26 = vmul.f32 %v121_v23, %v121_v23 }
 0x103   :  { %v124_v28 = vmul.f32 %v120_v25, %v120_v25 }
 0x104   :  { %v127_v30 = vadd.f32 %v125_v26, %v123_v24  ;;  %v62_v31 = vpop.permute.xlu1 %61 }
 0x105   :  { %v64_v32 = vsel %vm34_vm1, %v60_v29, %v62_v31  ;;  %v68_v33 = vadd.f32 %v62_v31, %v54_v27 }
 0x106   :  { %129 = vst.msk [vmem:[#allocation3 + $0x8] sm:$0xff] %vm37_vm0, %v127_v30 }
 0x107   :  { %70 = vst.msk [vmem:[#allocation2 + $0x8] sm:$0xff] %vm34_vm1, %v68_v33 }
 0x10d   :  { %v150_v34 = vld [vmem:[#allocation3 + $0x8] sm:$0xff] }
 0x10e   :  { %v151_v35 = vsel %vm37_vm0, %v150_v34, 0.0  ;;  %v134_v36 = vld [vmem:[#allocation2 + $0x8] sm:$0xff] }
 0x10f   :  { %v152_v37 = vadd.f32 %v151_v35, %v124_v28  ;;  %v135_v38 = vsel %vm34_vm1, %v134_v36, 0.0 }
 0x110   :  { %v136_v39 = vadd.f32 %v135_v38, %v64_v32 }
 0x111   :  { %153 = vadd.xlane.f32.xlu1 %v152_v37 }
 0x112   :  { %137 = vadd.xlane.f32.xlu0 %v136_v39 }
 0x19e   :  { %v154_v40 = vpop.xlane.xlu1 %153 }
 0x19f   :  { %v155_v41 = vrot.slane %v154_v40, 4  ;;  %v138_v42 = vpop.xlane.xlu0 %137 }
 0x1a0   :  { %v139_v43 = vrot.slane %v138_v42, 4 }
 0x1a1   :  { %v156_v44 = vadd.f32 %v155_v41, %v154_v40 }
 0x1a2   :  { %v140_v45 = vadd.f32 %v139_v43, %v138_v42 }
 0x1a3   :  { %v157_v46 = vrot.slane %v156_v44, 2 }
 0x1a4   :  { %v141_v47 = vrot.slane %v140_v45, 2 }
 0x1a5   :  { %v158_v48 = vadd.f32 %v157_v46, %v156_v44 }
 0x1a6   :  { %v142_v49 = vadd.f32 %v141_v47, %v140_v45 }
 0x1a7   :  { %v159_v50 = vrot.slane %v158_v48, 1 }
 0x1a8   :  { %v143_v51 = vrot.slane %v142_v49, 1 }
 0x1a9   :  { %v160_v52 = vadd.f32 %v159_v50, %v158_v48 }
 0x1aa   :  { %v144_v53 = vadd.f32 %v143_v51, %v142_v49 }
 0x1ac   :  { %193 = vpush %v144_v53 }
 0x1ad   :  { %195 = vpush %v160_v52 }
 0x1dd   :  { %s194_s28 = spop %193 }
 0x1de   :  { %v146_v54 = vstv %s194_s28  ;;  %s196_s29 = spop %195 }
 0x1df   :  { %v162_v55 = vstv %s196_s29  ;;  %148 = vst.msk [vmem:[#allocation7] sm:$0x1] %vm147_vm6, %v146_v54 }
 0x1e0   :  { %238 = shalt.err (!%p235_p12)
}
 0x1e1   :  { %s239_s6 = scalar_lea.hbm %s355_s1, 16 }
 0x1e2   :  { %p240_p13 = scmp.ne.s32.totalorder %s355_s1, %s239_s6  ;;  %p243_p0 = scmp.lt.u32.totalorder %s239_s6, %s355_s1 }
 0x1e4   :  { %p245_p1 = pnand %p243_p0, %p240_p13 }
 0x1e6   :  { %248 = shalt.err (!%p245_p1)
}
 0x1e7   :  { %173 = dma.vmem_to_hbm [thread:$0]  %s171_s25, 16, %s355_s1, [#allocation6]   ;;  %163 = vst.msk [vmem:[#allocation8] sm:$0x1] %vm147_vm6, %v162_v55 }
 0x1e8   :  { %s249_s13 = scalar_lea.vmem %s320_s27, 16  ;;  %s253_s14 = scalar_lea.vmem %s320_s27, 32 }
 0x1e9   :  { %p250_p2 = scmp.ne.s32.totalorder %s320_s27, %s249_s13  ;;  %p254_p3 = scmp.lt.s32.totalorder %s320_s27, %s320_s27 }
 0x1ea   :  { %p255_p4 = scmp.lt.s32.totalorder %s253_s14, %s249_s13 }
 0x1ec   :  { %p256_p5 = por %p255_p4, %p254_p3 }
 0x1ee   :  { %p257_p6 = pnand %p256_p5, %p250_p2 }
 0x1f0   :  { %260 = shalt.err (!%p257_p6)
}
 0x1f1   :  { %s261_s17 = scalar_lea.hbm %s356_s2, 16 }
 0x1f2   :  { %p262_p7 = scmp.ne.s32.totalorder %s356_s2, %s261_s17  ;;  %p265_p8 = scmp.lt.u32.totalorder %s261_s17, %s356_s2 }
 0x1f4   :  { %p267_p9 = pnand %p265_p8, %p262_p7 }
 0x1f6   :  { %270 = shalt.err (!%p267_p9)
}
 0x1f7   :  { %183 = dma.vmem_to_hbm [thread:$0]  %s320_s27, 16, %s356_s2, [#allocation9]  }
 0x1f8   :  { %273 = dma.done.wait [#allocation6], 16  }
 0x1f9   :  { %274 = vsyncadd [#allocation6], 4294967280 }
 0x1fa   :  { %275 = dma.done.wait [#allocation9], 16  }
 0x1fb   :  { %276 = vsyncadd [#allocation9], 4294967280 }
 0x1fc   :  { %190 = vsyncpa [#allocation5], 1 }
 0x1fd   :  { %191 = vsyncpa [#allocation6], 1 }
 0x1fe   :  { %192 = vsyncpa [#allocation9], 1 }

</bundles_post_ra>
